<compile_context>
chip_gen: v5e
topology: v5e:2x2
jax: 0.10.0
libtpu: 0.0.40
codegen_flags: <defaults>
</compile_context>

<pallas_src>
import functools

import jax
import jax.numpy as jnp
from jax import lax
from jax.experimental import pallas as pl
from jax.experimental.pallas import tpu as pltpu


def _concat_pool_kernel(x_ref, o_ref, *, c, inv_l):
    """Single-pass path (full L per block). x_ref: (tb, C, L); o_ref: (tb, 2*C)."""
    # One explicit widen: both reductions run in f32 anyway (v5e has no bf16 VPU),
    # and max(cast_f32(x)) cast back is exact for bf16/f32 inputs.
    xf = x_ref[...].astype(jnp.float32)
    mx = jnp.max(xf, axis=-1)                  # (tb, C)
    av = jnp.sum(xf, axis=-1) * inv_l          # (tb, C) f32 accumulation, no divide
    o_ref[:, :c] = mx.astype(o_ref.dtype)      # max channels   (torch.cat order)
    o_ref[:, c:] = av.astype(o_ref.dtype)      # mean channels


def _concat_pool_kernel_ltiled(x_ref, o_ref, max_acc, sum_acc, *, c, l_total, tl, inv_l):
    """L-tiled path. x_ref: (tb, C, tl); o_ref: (tb, 2*C); f32 VMEM accumulators."""
    li = pl.program_id(1)

    @pl.when(li == 0)
    def _():
        max_acc[...] = jnp.full(max_acc.shape, -jnp.inf, dtype=max_acc.dtype)
        sum_acc[...] = jnp.zeros(sum_acc.shape, dtype=sum_acc.dtype)

    xf = x_ref[...].astype(jnp.float32)
    if l_total % tl != 0:
        # Ragged last L-tile: out-of-range columns hold unspecified data; mask them.
        cols = lax.broadcasted_iota(jnp.int32, xf.shape, 2) + li * tl
        valid = cols < l_total
        x_for_max = jnp.where(valid, xf, -jnp.inf)
        x_for_sum = jnp.where(valid, xf, 0.0)
    else:
        x_for_max = xf
        x_for_sum = xf

    max_acc[...] = jnp.maximum(max_acc[...], jnp.max(x_for_max, axis=-1))
    sum_acc[...] = sum_acc[...] + jnp.sum(x_for_sum, axis=-1)

    @pl.when(li == pl.num_programs(1) - 1)
    def _():
        o_ref[:, :c] = max_acc[...].astype(o_ref.dtype)
        o_ref[:, c:] = (sum_acc[...] * inv_l).astype(o_ref.dtype)


def _round_down(v, m):
    return (v // m) * m


def _round_up(v, m):
    return -(-v // m) * m


def adaptive_concat_pool1d(x, tb=None, target_tile_bytes=8 << 20,
                           vmem_limit_bytes=48 << 20):
    """x: (N, C, L) -> (N, 2*C, 1), dtype preserved.

    Matches torch.cat([AdaptiveMaxPool1d(1)(x), AdaptiveAvgPool1d(1)(x)], dim=1).
    On v6e/v5e (128 MiB VMEM) callers may raise target_tile_bytes to 16-32 MiB.
    """
    N, C, L = x.shape
    itemsize = x.dtype.itemsize
    per_row_bytes = max(1, C * L * itemsize)
    inv_l = float(1.0 / L)

    cost = pl.CostEstimate(
        flops=2 * N * C * L,
        transcendentals=0,
        bytes_accessed=N * C * L * itemsize + N * 2 * C * itemsize,
    )

    # ----- batch tile (sublane-facing dim of the (tb, 2C) output block) -----
    if tb is None:
        rows_fit = max(1, target_tile_bytes // per_row_bytes)
        tb = min(rows_fit, N)
        if N >= 8:
            tb = max(8, _round_down(tb, 8))            # sublane-dense output stores
        if N >= 16:
            tb = min(tb, _round_up(pl.cdiv(N, 2), 8))  # >=2 grid steps (v7x megacore)
    tb = max(1, min(tb, N))
    if tb < N and tb % 8 != 0:
        # Keep the output block's sublane dim either a multiple of 8 or full-extent.
        tb = min(N, _round_up(tb, 8))

    use_l_tiling = per_row_bytes > target_tile_bytes and L >= 128
    # TODO(synk): rows with L < 128 but C so large that C*L*itemsize exceeds the VMEM
    # budget are not L-tiled (degenerate case); they fall back to the single-pass path.

    if not use_l_tiling:
        out = pl.pallas_call(
            functools.partial(_concat_pool_kernel, c=C, inv_l=inv_l),
            out_shape=jax.ShapeDtypeStruct((N, 2 * C), x.dtype),
            grid_spec=pltpu.PrefetchScalarGridSpec(
                num_scalar_prefetch=0,
                grid=(pl.cdiv(N, tb),),
                in_specs=[pl.BlockSpec((tb, C, L), lambda i: (i, 0, 0))],
                out_specs=pl.BlockSpec((tb, 2 * C), lambda i: (i, 0)),
            ),
            compiler_params=pltpu.CompilerParams(
                dimension_semantics=("parallel",),
                vmem_limit_bytes=vmem_limit_bytes,
            ),
            cost_estimate=cost,
        )(x)
    else:
        # Tile the reduction axis: tl a multiple of 128 (lane-aligned input blocks).
        lane_budget = max(1, target_tile_bytes // max(1, tb * C * itemsize))
        tl = max(128, _round_down(lane_budget, 128))
        tl = min(tl, _round_down(L, 128))
        out = pl.pallas_call(
            functools.partial(_concat_pool_kernel_ltiled, c=C, l_total=L, tl=tl,
                              inv_l=inv_l),
            out_shape=jax.ShapeDtypeStruct((N, 2 * C), x.dtype),
            grid_spec=pltpu.PrefetchScalarGridSpec(
                num_scalar_prefetch=0,
                grid=(pl.cdiv(N, tb), pl.cdiv(L, tl)),        # reduction axis last
                in_specs=[pl.BlockSpec((tb, C, tl), lambda i, l: (i, 0, l))],
                out_specs=pl.BlockSpec((tb, 2 * C), lambda i, l: (i, 0)),
                scratch_shapes=[pltpu.VMEM((tb, C), jnp.float32),   # running max
                                pltpu.VMEM((tb, C), jnp.float32)],  # running sum
            ),
            compiler_params=pltpu.CompilerParams(
                dimension_semantics=("parallel", "arbitrary"),
                vmem_limit_bytes=vmem_limit_bytes,
            ),
            cost_estimate=cost,
        )(x)

    # (N, 2C) -> (N, 2C, 1): columns [0, C) are max-per-channel, [C, 2C) are mean,
    # so this reshape reproduces torch.cat([max, mean], dim=1) exactly.
    return out.reshape(N, 2 * C, 1)


def _reference(x):
    return jnp.concatenate(
        [jnp.max(x, axis=-1, keepdims=True),
         jnp.mean(x, axis=-1, keepdims=True)],
        axis=1,
    )


if __name__ == "__main__":
    key = jax.random.PRNGKey(0)

    # Primary small test consistent with the module's forward: (N, C, L) = (2, 4, 16).
    N, C, L = 2, 4, 16
    x = jax.random.normal(key, (N, C, L), dtype=jnp.float32)
    out = jax.block_until_ready(adaptive_concat_pool1d(x))
    ref = _reference(x)
    assert out.shape == (N, 2 * C, 1), out.shape
    assert jnp.allclose(out, ref, atol=1e-6, rtol=1e-6), "mismatch (single-pass)"

    # Ragged batch blocks: N not divisible by the auto-picked tb (and >=2 grid steps).
    N2, C2, L2 = 20, 8, 32
    x2 = jax.random.normal(jax.random.PRNGKey(1), (N2, C2, L2), dtype=jnp.float32)
    out2 = jax.block_until_ready(adaptive_concat_pool1d(x2))
    ref2 = _reference(x2)
    assert out2.shape == (N2, 2 * C2, 1), out2.shape
    assert jnp.allclose(out2, ref2, atol=1e-6, rtol=1e-6), "mismatch (ragged batch)"

    # L-tiled reduction path, forced via a tiny tile budget; ragged last L tile (576 % 128 != 0).
    N3, C3, L3 = 4, 16, 576
    x3 = jax.random.normal(jax.random.PRNGKey(2), (N3, C3, L3), dtype=jnp.float32)
    out3 = jax.block_until_ready(
        adaptive_concat_pool1d(x3, target_tile_bytes=16 * 1024))
    ref3 = _reference(x3)
    assert out3.shape == (N3, 2 * C3, 1), out3.shape
    assert jnp.allclose(out3, ref3, atol=1e-5, rtol=1e-5), "mismatch (L-tiled)"

    print("KERNEL_OK")
</pallas_src>

<mosaic_0001>
module attributes {stable_mosaic.version = 11 : i64} {
  func.func @_concat_pool_kernel(%arg0: i32, %arg1: memref<2x4x16xf32, #tpu.memory_space<vmem>>, %arg2: memref<2x8xf32, #tpu.memory_space<vmem>>) attributes {dimension_semantics = [#tpu.dimension_semantics<parallel>], iteration_bounds = array<i64: 1>, scalar_prefetch = 0 : i64, scratch_operands = 0 : i64, tpu.core_type = #tpu.core_type<tc>, window_params = [{transform_indices = @transform_0, window_bounds = array<i64: 2, 4, 16>}, {transform_indices = @transform_1, window_bounds = array<i64: 2, 8>}]} {
    %c0 = arith.constant 0 : index
    %c0_0 = arith.constant 0 : index
    %c0_1 = arith.constant 0 : index
    %0 = vector.load %arg1[%c0, %c0_0, %c0_1] : memref<2x4x16xf32, #tpu.memory_space<vmem>>, vector<2x4x16xf32>
    %cst = arith.constant dense<0xFF800000> : vector<2x4xf32>
    %1 = vector.multi_reduction <maximumf>, %0, %cst [2] : vector<2x4x16xf32> to vector<2x4xf32>
    %cst_2 = arith.constant dense<0.000000e+00> : vector<2x4xf32>
    %2 = vector.multi_reduction <add>, %0, %cst_2 [2] : vector<2x4x16xf32> to vector<2x4xf32>
    %cst_3 = arith.constant 6.250000e-02 : f32
    %3 = vector.broadcast %cst_3 : f32 to vector<2x4xf32>
    %4 = arith.mulf %2, %3 : vector<2x4xf32>
    %c0_4 = arith.constant 0 : index
    %c0_5 = arith.constant 0 : index
    %5 = vector.load %arg2[%c0_4, %c0_5] : memref<2x8xf32, #tpu.memory_space<vmem>>, vector<2x4xf32>
    tpu.vector_store %arg2[%c0_4, %c0_5], %1 {strides = array<i32>} : memref<2x8xf32, #tpu.memory_space<vmem>>, vector<2x4xf32>,
    %c0_6 = arith.constant 0 : index
    %c4 = arith.constant 4 : index
    %6 = vector.load %arg2[%c0_6, %c4] : memref<2x8xf32, #tpu.memory_space<vmem>>, vector<2x4xf32>
    tpu.vector_store %arg2[%c0_6, %c4], %4 {strides = array<i32>} : memref<2x8xf32, #tpu.memory_space<vmem>>, vector<2x4xf32>,
    return
  }
  func.func @transform_0(%arg0: i32) -> (i32, i32, i32) {
    %c0_i32 = arith.constant 0 : i32
    %c0_i32_0 = arith.constant 0 : i32
    %c0_i32_1 = arith.constant 0 : i32
    return %arg0, %c0_i32, %c0_i32_0 : i32, i32, i32
  }
  func.func @transform_1(%arg0: i32) -> (i32, i32) {
    %c0_i32 = arith.constant 0 : i32
    %c0_i32_0 = arith.constant 0 : i32
    return %arg0, %c0_i32 : i32, i32
  }
}

</mosaic_0001>

<bundles_post_ra>
// kernel: tpu_custom_call.1
= control target key start
LH: loop header
LB: loop body
LE: loop exit
PB: predicated region body
PF: predicated region fallthrough
CT: control target
= control target key end

     0   :  { %6 = vsyncpa [#allocation3], 0  ;;  %s157_s0 = inlined_call_operand.hbm [shape: f32[2,4,16], index: 0, kind: input, shape index: {}]   ;;  %s158_s1 = inlined_call_operand.hbm [shape: f32[2,8], index: 1, kind: output, shape index: {}]  }
   0x1   :  { %7 = vsyncpa [#allocation4], 0  ;;  %s12_s8 = sshll.u32 %s157_s0, 4  ;;  %s135_s9 = smov [#allocation2]   ;;  %s13_s8 = int_to_ptr.hbm [resolvable:$true] %s12_s8 }
   0x2   :  { %s14_s10 = sshll.u32 %s135_s9, 4  ;;  %s136_s11 = smov 64   ;;  %s15_s10 = int_to_ptr.vmem [resolvable:$true] %s14_s10 }
   0x3   :  { %s137_s12 = smov 4  }
   0x4   :  { %20 = dma.hbm_to_vmem [thread:$0]  %s13_s8, 128, %s15_s10, [#allocation3], %s136_s11, %s136_s11, %s137_s12  }
   0x5   :  { %131 = dma.done.wait [#allocation3], 128  }
   0x6   :  { %132 = vsyncadd [#allocation3], 4294967168  ;;  %vm27_vm0 = vcmask 125952   ;;  %v25_v0 = vld [vmem:[#allocation2] sm:$0xf]  ;;  %v44_v6 = vlaneseq  ;;  %vm48_vm1 = vcmask 1041409  }
   0x7   :  { %v34_v1 = vsel %vm27_vm0, %v25_v0, 0.0  ;;  %v28_v2 = vsel %vm27_vm0, %v25_v0, -inf  ;;  %v26_v3 = vld [vmem:[#allocation2 + $0x4] sm:$0xf]  ;;  %vm51_vm2 = vcmask 25600   ;;  %s138_s0 = smov [#allocation5]  }
   0x8   :  { %35 = vadd.xlane.f32.xlu0 %v34_v1  ;;  %29 = vmax.xlane.f32.xlu1 %v28_v2  ;;  %v37_v4 = vsel %vm27_vm0, %v26_v3, 0.0  ;;  %v31_v5 = vsel %vm27_vm0, %v26_v3, -inf  ;;  %v45_v9 = vand.u32 127, %v44_v6  ;;  %s67_s13 = sshll.u32 %s138_s0, 4  ;;  %s69_s16 = sshll.u32 %s158_s1, 4  ;;  %vm60_vm3 = vcmask 58400   ;;  %s68_s13 = int_to_ptr.vmem [resolvable:$true] %s67_s13  ;;  %s70_s16 = int_to_ptr.hbm [resolvable:$true] %s69_s16 }
   0xa   :  { %v55_v10 = vadd.s32 4294967292, %v45_v9 }
  0x10   :  { %38 = vadd.xlane.f32.xlu0 %v37_v4  ;;  %32 = vmax.xlane.f32.xlu1 %v31_v5 }
  0x7b   :  { %v36_v7 = vpop.xlane.xlu0 %35  ;;  %v30_v8 = vpop.xlane.xlu1 %29 }
  0x7c   :  { %v40_v11 = vmul.f32 0.0625, %v36_v7  ;;  %v46_v14 = vperm.slane %v30_v8, %v45_v9 }
  0x7e   :  { %v56_v17 = vperm.slane %v40_v11, %v55_v10 }
  0x83   :  { %v39_v12 = vpop.xlane.xlu0 %38  ;;  %v33_v13 = vpop.xlane.xlu1 %32 }
  0x84   :  { %v41_v15 = vmul.f32 0.0625, %v39_v12  ;;  %v47_v16 = vperm.slane %v33_v13, %v45_v9 }
  0x86   :  { %v57_v18 = vperm.slane %v41_v15, %v55_v10  ;;  %v49_v19 = vsel %vm48_vm1, %v47_v16, %v46_v14 }
  0x87   :  { %52 = vst.msk [vmem:[#allocation5] sm:$0x3] %vm51_vm2, %v49_v19 }
  0x88   :  { %v58_v20 = vsel %vm48_vm1, %v57_v18, %v56_v17 }
  0x89   :  { %61 = vst.msk [vmem:[#allocation5] sm:$0x3] %vm60_vm3, %v58_v20 }
  0x8a   :  { %72 = dma.vmem_to_hbm [thread:$0]  %s68_s13, 32, %s70_s16, [#allocation4]  }
  0x8b   :  { %133 = dma.done.wait [#allocation4], 32  }
  0x8c   :  { %134 = vsyncadd [#allocation4], 4294967264 }
  0x8d   :  { %77 = vsyncpa [#allocation3], 1 }
  0x8e   :  { %78 = vsyncpa [#allocation4], 1 }

</bundles_post_ra>
